<compile_context>
chip_gen: v6e
topology: v6e:2x2x1
jax: 0.10.0
libtpu: 0.0.40
codegen_flags: <defaults>
</compile_context>

<pallas_src>
import functools
import math

import jax
import jax.numpy as jnp
from jax.experimental import pallas as pl
from jax.experimental.pallas import tpu as pltpu


# ----------------------------------------------------------------------------
# In-kernel helpers
# ----------------------------------------------------------------------------
def _layernorm(x, w, b, eps=1e-5):
    # Two-pass (numerically safe) statistics: mean, then E[(x - mu)^2].
    mu = jnp.mean(x, axis=-1, keepdims=True)
    xc = x - mu
    var = jnp.mean(xc * xc, axis=-1, keepdims=True)
    return xc * jax.lax.rsqrt(var + eps) * w + b


# ----------------------------------------------------------------------------
# Pallas kernel: ONE transformer layer for ONE batch element per grid step.
# grid = (B, L); residual stream resident in VMEM scratch across the L axis.
# ----------------------------------------------------------------------------
def decoder_layer_kernel(
    x_ref,                                   # (1, T, C)  f32  (batch block)
    ln1w_ref, ln1b_ref,                      # (1, 1, C)  f32
    wqkv_ref, bqkv_ref,                      # (1, C, 3C) bf16, (1, 1, 3C) f32
    wproj_ref, bproj_ref,                    # (1, C, C)  bf16, (1, 1, C)  f32
    ln2w_ref, ln2b_ref,                      # (1, 1, C)  f32
    wfc1_ref, bfc1_ref,                      # (1, C, M)  bf16, (1, 1, M)  f32
    wfc2_ref, bfc2_ref,                      # (1, M, C)  bf16, (1, 1, C)  f32
    o_ref,                                   # (1, T, C)  f32
    acc_ref,                                 # (T, C)     f32 VMEM scratch (resident residual)
    *, num_heads,
):
    T, C = acc_ref.shape
    H = num_heads
    Dh = C // H
    layer = pl.program_id(1)
    num_layers = pl.num_programs(1)

    # Residual stream becomes resident at the first layer of each batch block.
    @pl.when(layer == 0)
    def _():
        acc_ref[...] = x_ref[0].astype(jnp.float32)

    x = acc_ref[...]

    # ---------------- multi-head self attention (pre-norm) ------------------
    h = _layernorm(x, ln1w_ref[0], ln1b_ref[0])
    qkv = jnp.dot(h.astype(jnp.bfloat16), wqkv_ref[0],
                  preferred_element_type=jnp.float32) + bqkv_ref[0]   # (T, 3C)

    # Head-batched layout (H, T, Dh): lane slice -> 2-D transpose ->
    # sublane-group split -> last-two-dim swap (all Mosaic-friendly).
    def to_heads(slab):                                   # (T, C) -> (H, T, Dh)
        return jnp.swapaxes(slab.T.reshape(H, Dh, T), 1, 2)

    # 1/sqrt(Dh) scale is pre-folded into the Q columns of w_qkv / b_qkv.
    q = to_heads(qkv[:, 0 * C:1 * C]).astype(jnp.bfloat16)
    k = to_heads(qkv[:, 1 * C:2 * C]).astype(jnp.bfloat16)
    v = to_heads(qkv[:, 2 * C:3 * C]).astype(jnp.bfloat16)

    s = jnp.einsum('hqd,hkd->hqk', q, k,
                   preferred_element_type=jnp.float32)               # (H, T, T)
    s = s - jnp.max(s, axis=-1, keepdims=True)
    p = jnp.exp(s)
    # EUP approx reciprocal: softmax rows sum to 1 +/- ~1e-3 (inference-ok).
    p = p * pl.reciprocal(jnp.sum(p, axis=-1, keepdims=True), approx=True)
    o = jnp.einsum('hqk,hkd->hqd', p.astype(jnp.bfloat16), v,
                   preferred_element_type=jnp.float32)               # (H, T, Dh)

    attn = jnp.swapaxes(o, 1, 2).reshape(C, T).T                     # (T, C)
    attn = jnp.dot(attn.astype(jnp.bfloat16), wproj_ref[0],
                   preferred_element_type=jnp.float32) + bproj_ref[0]
    x = x + attn

    # ---------------- MLP (pre-norm) -----------------------------------------
    h2 = _layernorm(x, ln2w_ref[0], ln2b_ref[0])
    m = jnp.dot(h2.astype(jnp.bfloat16), wfc1_ref[0],
                preferred_element_type=jnp.float32) + bfc1_ref[0]
    # TODO(synk): torch nn.GELU defaults to exact erf; tanh approximation used.
    m = jax.nn.gelu(m, approximate=True)
    m = jnp.dot(m.astype(jnp.bfloat16), wfc2_ref[0],
                preferred_element_type=jnp.float32) + bfc2_ref[0]
    x = x + m

    acc_ref[...] = x

    @pl.when(layer == num_layers - 1)
    def _():
        o_ref[0] = x.astype(o_ref.dtype)


def _vmem_limit_bytes(T, C, M, H):
    """VMEM budget from actual block sizes (double-buffered) + headroom."""
    bf16, f32 = 2, 4
    w_layer = (C * 3 * C + C * C + C * M + M * C) * bf16           # bf16 matmul weights
    w_layer += (3 * C + C + M + C + 4 * C) * f32                   # biases + LN params
    act_blk = T * C * f32                                          # one (1, T, C) block
    interm = (3 * T * C + H * T * T + T * M + 2 * T * C) * f32     # qkv/scores/mlp/attn
    scratch = T * C * f32                                          # resident residual
    est = 2 * (w_layer + 2 * act_blk) + scratch + interm           # x2 double-buffering
    est = int(est * 1.25) + (8 << 20)                              # compiler headroom
    return max(min(est, 48 << 20), 16 << 20)                       # stay < v7x 64 MiB


def decoder_stack(x, p, num_heads):
    """Fused pre-norm transformer stack.  x: (B, T, C) f32; p: layer-stacked weights."""
    B, T, C = x.shape
    L = p["w_qkv"].shape[0]
    M = p["w_fc1"].shape[-1]
    scale = 1.0 / math.sqrt(C // num_heads)

    # Fold the softmax scale into the Q columns of the QKV projection (XLA, free).
    w_qkv = jnp.concatenate([p["w_qkv"][..., :C] * scale, p["w_qkv"][..., C:]], axis=-1)
    b_qkv = jnp.concatenate([p["b_qkv"][..., :C] * scale, p["b_qkv"][..., C:]], axis=-1)

    def wspec(arr):
        shape = tuple(arr.shape)
        return pl.BlockSpec((1,) + shape[1:], lambda b, l: (l, 0, 0))

    xspec = pl.BlockSpec((1, T, C), lambda b, l: (b, 0, 0))
    kernel = functools.partial(decoder_layer_kernel, num_heads=num_heads)

    return pl.pallas_call(
        kernel,
        out_shape=jax.ShapeDtypeStruct((B, T, C), x.dtype),
        grid_spec=pltpu.PrefetchScalarGridSpec(
            num_scalar_prefetch=0,
            grid=(B, L),                      # batch "parallel", layer axis last ("arbitrary")
            in_specs=[
                xspec,
                wspec(p["ln1_w"]), wspec(p["ln1_b"]),
                wspec(w_qkv), wspec(b_qkv),
                wspec(p["w_proj"]), wspec(p["b_proj"]),
                wspec(p["ln2_w"]), wspec(p["ln2_b"]),
                wspec(p["w_fc1"]), wspec(p["b_fc1"]),
                wspec(p["w_fc2"]), wspec(p["b_fc2"]),
            ],
            out_specs=xspec,
            scratch_shapes=[pltpu.VMEM((T, C), jnp.float32)],
        ),
        compiler_params=pltpu.CompilerParams(
            dimension_semantics=("parallel", "arbitrary"),
            vmem_limit_bytes=_vmem_limit_bytes(T, C, M, num_heads),
        ),
    )(
        x,
        p["ln1_w"], p["ln1_b"],
        w_qkv.astype(jnp.bfloat16), b_qkv,
        p["w_proj"].astype(jnp.bfloat16), p["b_proj"],
        p["ln2_w"], p["ln2_b"],
        p["w_fc1"].astype(jnp.bfloat16), p["b_fc1"],
        p["w_fc2"].astype(jnp.bfloat16), p["b_fc2"],
    )


# Pure-JAX reference for the same stack (f32, exact softmax) — correctness check.
def decoder_stack_ref(x, p, num_heads):
    B, T, C = x.shape
    H = num_heads
    Dh = C // H
    L = p["w_qkv"].shape[0]
    scale = 1.0 / math.sqrt(Dh)

    def ln(v, w, b, eps=1e-5):
        mu = jnp.mean(v, -1, keepdims=True)
        var = jnp.mean((v - mu) ** 2, -1, keepdims=True)
        return (v - mu) * jax.lax.rsqrt(var + eps) * w + b

    for l in range(L):
        h = ln(x, p["ln1_w"][l], p["ln1_b"][l])
        qkv = h @ p["w_qkv"][l] + p["b_qkv"][l]
        q, k, v = jnp.split(qkv, 3, axis=-1)
        q = q.reshape(B, T, H, Dh).transpose(0, 2, 1, 3)
        k = k.reshape(B, T, H, Dh).transpose(0, 2, 1, 3)
        v = v.reshape(B, T, H, Dh).transpose(0, 2, 1, 3)
        s = jnp.einsum('bhqd,bhkd->bhqk', q, k) * scale
        a = jax.nn.softmax(s, axis=-1)
        o = jnp.einsum('bhqk,bhkd->bhqd', a, v)
        o = o.transpose(0, 2, 1, 3).reshape(B, T, C)
        x = x + o @ p["w_proj"][l] + p["b_proj"][l]
        h2 = ln(x, p["ln2_w"][l], p["ln2_b"][l])
        m = jax.nn.gelu(h2 @ p["w_fc1"][l] + p["b_fc1"][l], approximate=True)
        x = x + m @ p["w_fc2"][l] + p["b_fc2"][l]
    return x


# ----------------------------------------------------------------------------
# Glue (plain JAX): token gather / concat / positional & modality embeddings /
# masks / per-modality output heads.  Kept in (B, T, C) layout end-to-end.
# ----------------------------------------------------------------------------
def decoder_forward(params, z_list, backward_list, args, num_heads,
                    stack_fn=decoder_stack):
    emb = args[0][1] * args[0][3]
    T_keep = [z_.shape[0] for z_ in z_list]
    B = z_list[0].shape[1]

    tokens = []
    for i, (z_, backward_) in enumerate(zip(z_list, backward_list)):
        Tfull = backward_.shape[0]
        z_bt = jnp.transpose(z_, (1, 0, 2))                       # (B, t, C), small
        mask_tok = jnp.broadcast_to(params["mask_token"],
                                    (B, Tfull - z_.shape[0], emb))
        tmp = jnp.concatenate([z_bt, mask_tok], axis=1)           # (B, Tfull, C)
        idx = jnp.broadcast_to(backward_.T[:, :, None], (B, Tfull, emb))
        tmp = jnp.take_along_axis(tmp, idx, axis=1)               # un-shuffle
        tmp = tmp + params["positions"][i] + params["modalities"][i]
        tokens.append(tmp)

    x = jnp.concatenate(tokens, axis=1)                           # (B, T_total, C)
    x = stack_fn(x, params, num_heads)                            # fused Pallas stack

    # masks: 1 where the (un-shuffled) token was a mask token.
    mask_all = []
    for i, (t, backward_) in enumerate(zip(T_keep, backward_list)):
        c = args[i][1]
        m = (backward_.T >= t).astype(x.dtype)                    # (B, Tfull)
        mask_all.append(jnp.broadcast_to(m[:, :, None], (B, args[i][0], c)))

    # per-modality heads: tiny masked-lane matmuls — leave to XLA (perf review)
    outs = []
    length = 0
    for i in range(len(args)):
        Tfull, c, d = args[i][0], args[i][1], args[i][3]
        w, b = params["heads"][i]
        tmp = x[:, length:length + Tfull].reshape(B, Tfull, c, d)
        outs.append(jnp.dot(tmp, w) + b)
        length += Tfull
    return outs, mask_all


# ----------------------------------------------------------------------------
# Deterministic parameter init (synthetic — no checkpoint), layer-stacked.
# ----------------------------------------------------------------------------
def init_params(key, args, dim_tokens, num_layer, num_head, mlp_ratio):
    emb = args[0][1] * args[0][3]
    hidden = int(emb * mlp_ratio)
    keys = iter(jax.random.split(key, 256))

    def nrm(shape, std=0.02):
        return (std * jax.random.normal(next(keys), shape)).astype(jnp.float32)

    params = {
        "mask_token": jnp.zeros((1, 1, emb), jnp.float32),
        "modalities": [nrm((1, 1, emb)) for _ in args],
        "positions": [nrm((1, a[0], emb)) for a in args],
        "heads": [
            (
                nrm((a[3], dim_tokens[i]), std=1.0 / math.sqrt(a[3])),
                jnp.zeros((dim_tokens[i],), jnp.float32),
            )
            for i, a in enumerate(args)
        ],
        # transformer weights stacked on a leading layer axis
        "ln1_w": jnp.ones((num_layer, 1, emb), jnp.float32),
        "ln1_b": jnp.zeros((num_layer, 1, emb), jnp.float32),
        "w_qkv": nrm((num_layer, emb, 3 * emb)),
        "b_qkv": jnp.zeros((num_layer, 1, 3 * emb), jnp.float32),
        "w_proj": nrm((num_layer, emb, emb)),
        "b_proj": jnp.zeros((num_layer, 1, emb), jnp.float32),
        "ln2_w": jnp.ones((num_layer, 1, emb), jnp.float32),
        "ln2_b": jnp.zeros((num_layer, 1, emb), jnp.float32),
        "w_fc1": nrm((num_layer, emb, hidden)),
        "b_fc1": jnp.zeros((num_layer, 1, hidden), jnp.float32),
        "w_fc2": nrm((num_layer, hidden, emb)),
        "b_fc2": jnp.zeros((num_layer, 1, emb), jnp.float32),
    }
    return params


# ----------------------------------------------------------------------------
if __name__ == "__main__":
    key = jax.random.PRNGKey(0)

    # args[i] = (num_tokens, c, unused, d) with c*d == embed dim (32) for all.
    args = ((8, 4, 0, 8), (6, 2, 0, 16))
    dim_tokens = [16, 12]
    num_layer = 2
    num_head = 4
    mlp_ratio = 4.0
    B = 2
    emb = args[0][1] * args[0][3]
    T_keep = [5, 3]                      # visible (unmasked) tokens per modality

    kp, kz0, kz1, kb0, kb1 = jax.random.split(key, 5)
    params = init_params(kp, args, dim_tokens, num_layer, num_head, mlp_ratio)

    z = [
        jax.random.normal(kz0, (T_keep[0], B, emb), jnp.float32),
        jax.random.normal(kz1, (T_keep[1], B, emb), jnp.float32),
    ]

    def make_backward(k, tfull, bsz):
        cols = []
        for _ in range(bsz):
            k, sk = jax.random.split(k)
            cols.append(jax.random.permutation(sk, tfull))
        return jnp.stack(cols, axis=1).astype(jnp.int32)

    backward = [
        make_backward(kb0, args[0][0], B),
        make_backward(kb1, args[1][0], B),
    ]

    outs, masks = decoder_forward(params, z, backward, args, num_head)
    for o in outs + masks:
        jax.block_until_ready(o)

    assert outs[0].shape == (B, args[0][0], args[0][1], dim_tokens[0])
    assert outs[1].shape == (B, args[1][0], args[1][1], dim_tokens[1])
    assert masks[0].shape == (B, args[0][0], args[0][1])
    assert masks[1].shape == (B, args[1][0], args[1][1])

    # Correctness vs. an f32 pure-JAX reference of the same stack
    # (kernel uses bf16 MXU inputs + approx softmax reciprocal).
    ref_outs, ref_masks = decoder_forward(params, z, backward, args, num_head,
                                          stack_fn=decoder_stack_ref)
    for o, r in zip(outs, ref_outs):
        assert float(jnp.max(jnp.abs(o - r))) < 5e-2
    for m, rm in zip(masks, ref_masks):
        assert float(jnp.max(jnp.abs(m - rm))) == 0.0

    print("KERNEL_OK")
</pallas_src>

<mosaic_0001>
module attributes {stable_mosaic.version = 11 : i64} {
  func.func @decoder_layer_kernel(%arg0: i32, %arg1: i32, %arg2: memref<1x14x32xf32, #tpu.memory_space<vmem>>, %arg3: memref<1x1x32xf32, #tpu.memory_space<vmem>>, %arg4: memref<1x1x32xf32, #tpu.memory_space<vmem>>, %arg5: memref<1x32x96xbf16, #tpu.memory_space<vmem>>, %arg6: memref<1x1x96xf32, #tpu.memory_space<vmem>>, %arg7: memref<1x32x32xbf16, #tpu.memory_space<vmem>>, %arg8: memref<1x1x32xf32, #tpu.memory_space<vmem>>, %arg9: memref<1x1x32xf32, #tpu.memory_space<vmem>>, %arg10: memref<1x1x32xf32, #tpu.memory_space<vmem>>, %arg11: memref<1x32x128xbf16, #tpu.memory_space<vmem>>, %arg12: memref<1x1x128xf32, #tpu.memory_space<vmem>>, %arg13: memref<1x128x32xbf16, #tpu.memory_space<vmem>>, %arg14: memref<1x1x32xf32, #tpu.memory_space<vmem>>, %arg15: memref<1x14x32xf32, #tpu.memory_space<vmem>>, %arg16: memref<14x32xf32, #tpu.memory_space<vmem>>) attributes {dimension_semantics = [#tpu.dimension_semantics<parallel>, #tpu.dimension_semantics<arbitrary>], iteration_bounds = array<i64: 2, 2>, scalar_prefetch = 0 : i64, scratch_operands = 1 : i64, tpu.core_type = #tpu.core_type<tc>, window_params = [{transform_indices = @transform_0, window_bounds = array<i64: 1, 14, 32>}, {transform_indices = @transform_1, window_bounds = array<i64: 1, 1, 32>}, {transform_indices = @transform_2, window_bounds = array<i64: 1, 1, 32>}, {transform_indices = @transform_3, window_bounds = array<i64: 1, 32, 96>}, {transform_indices = @transform_4, window_bounds = array<i64: 1, 1, 96>}, {transform_indices = @transform_5, window_bounds = array<i64: 1, 32, 32>}, {transform_indices = @transform_6, window_bounds = array<i64: 1, 1, 32>}, {transform_indices = @transform_7, window_bounds = array<i64: 1, 1, 32>}, {transform_indices = @transform_8, window_bounds = array<i64: 1, 1, 32>}, {transform_indices = @transform_9, window_bounds = array<i64: 1, 32, 128>}, {transform_indices = @transform_10, window_bounds = array<i64: 1, 1, 128>}, {transform_indices = @transform_11, window_bounds = array<i64: 1, 128, 32>}, {transform_indices = @transform_12, window_bounds = array<i64: 1, 1, 32>}, {transform_indices = @transform_13, window_bounds = array<i64: 1, 14, 32>}]} {
    %c0_i32 = arith.constant 0 : i32
    %0 = arith.cmpi eq, %arg1, %c0_i32 : i32
    %1 = arith.extui %0 : i1 to i32
    %c0_i32_0 = arith.constant 0 : i32
    %2 = arith.cmpi ne, %1, %c0_i32_0 : i32
    scf.if %2 {
      %c0_62 = arith.constant 0 : index
      %c0_63 = arith.constant 0 : index
      %c0_64 = arith.constant 0 : index
      %134 = vector.load %arg2[%c0_62, %c0_63, %c0_64] : memref<1x14x32xf32, #tpu.memory_space<vmem>>, vector<1x14x32xf32>
      %135 = vector.shape_cast %134 : vector<1x14x32xf32> to vector<14x32xf32>
      %c0_65 = arith.constant 0 : index
      %c0_66 = arith.constant 0 : index
      %136 = vector.load %arg16[%c0_65, %c0_66] : memref<14x32xf32, #tpu.memory_space<vmem>>, vector<14x32xf32>
      tpu.vector_store %arg16[%c0_65, %c0_66], %135 {strides = array<i32>} : memref<14x32xf32, #tpu.memory_space<vmem>>, vector<14x32xf32>,
    } else {
    }
    %c0 = arith.constant 0 : index
    %c0_1 = arith.constant 0 : index
    %3 = vector.load %arg16[%c0, %c0_1] : memref<14x32xf32, #tpu.memory_space<vmem>>, vector<14x32xf32>
    %c0_2 = arith.constant 0 : index
    %c0_3 = arith.constant 0 : index
    %c0_4 = arith.constant 0 : index
    %4 = vector.load %arg3[%c0_2, %c0_3, %c0_4] : memref<1x1x32xf32, #tpu.memory_space<vmem>>, vector<1x1x32xf32>
    %5 = vector.shape_cast %4 : vector<1x1x32xf32> to vector<1x32xf32>
    %c0_5 = arith.constant 0 : index
    %c0_6 = arith.constant 0 : index
    %c0_7 = arith.constant 0 : index
    %6 = vector.load %arg4[%c0_5, %c0_6, %c0_7] : memref<1x1x32xf32, #tpu.memory_space<vmem>>, vector<1x1x32xf32>
    %7 = vector.shape_cast %6 : vector<1x1x32xf32> to vector<1x32xf32>
    %cst = arith.constant dense<0.000000e+00> : vector<14xf32>
    %8 = vector.multi_reduction <add>, %3, %cst [1] : vector<14x32xf32> to vector<14xf32>
    %9 = vector.shape_cast %8 : vector<14xf32> to vector<14x1xf32>
    %cst_8 = arith.constant 3.200000e+01 : f32
    %10 = vector.broadcast %cst_8 : f32 to vector<14x1xf32>
    %11 = arith.divf %9, %10 : vector<14x1xf32>
    %12 = vector.broadcast %11 : vector<14x1xf32> to vector<14x32xf32>
    %13 = arith.subf %3, %12 : vector<14x32xf32>
    %14 = arith.mulf %13, %13 : vector<14x32xf32>
    %cst_9 = arith.constant dense<0.000000e+00> : vector<14xf32>
    %15 = vector.multi_reduction <add>, %14, %cst_9 [1] : vector<14x32xf32> to vector<14xf32>
    %16 = vector.shape_cast %15 : vector<14xf32> to vector<14x1xf32>
    %cst_10 = arith.constant 3.200000e+01 : f32
    %17 = vector.broadcast %cst_10 : f32 to vector<14x1xf32>
    %18 = arith.divf %16, %17 : vector<14x1xf32>
    %cst_11 = arith.constant 9.99999974E-6 : f32
    %19 = vector.broadcast %cst_11 : f32 to vector<14x1xf32>
    %20 = arith.addf %18, %19 : vector<14x1xf32>
    %21 = math.rsqrt %20 : vector<14x1xf32>
    %22 = vector.broadcast %21 : vector<14x1xf32> to vector<14x32xf32>
    %23 = arith.mulf %13, %22 : vector<14x32xf32>
    %24 = vector.broadcast %5 : vector<1x32xf32> to vector<14x32xf32>
    %25 = arith.mulf %23, %24 : vector<14x32xf32>
    %26 = vector.broadcast %7 : vector<1x32xf32> to vector<14x32xf32>
    %27 = arith.addf %25, %26 : vector<14x32xf32>
    %28 = arith.truncf %27 : vector<14x32xf32> to vector<14x32xbf16>
    %c0_12 = arith.constant 0 : index
    %c0_13 = arith.constant 0 : index
    %c0_14 = arith.constant 0 : index
    %29 = vector.load %arg5[%c0_12, %c0_13, %c0_14] : memref<1x32x96xbf16, #tpu.memory_space<vmem>>, vector<1x32x96xbf16>
    %30 = vector.shape_cast %29 : vector<1x32x96xbf16> to vector<32x96xbf16>
    %cst_15 = arith.constant dense<0.000000e+00> : vector<14x96xf32>
    %31 = tpu.matmul %28, %30, %cst_15 {dimension_numbers = #tpu.dot_dimension_numbers<[1], [0], [0], [1], [0, 0, 1, 1], [], []>} : vector<14x32xbf16>, vector<32x96xbf16>, vector<14x96xf32> -> vector<14x96xf32>
    %c0_16 = arith.constant 0 : index
    %c0_17 = arith.constant 0 : index
    %c0_18 = arith.constant 0 : index
    %32 = vector.load %arg6[%c0_16, %c0_17, %c0_18] : memref<1x1x96xf32, #tpu.memory_space<vmem>>, vector<1x1x96xf32>
    %33 = vector.shape_cast %32 : vector<1x1x96xf32> to vector<1x96xf32>
    %34 = vector.broadcast %33 : vector<1x96xf32> to vector<14x96xf32>
    %35 = arith.addf %31, %34 : vector<14x96xf32>
    %36 = vector.extract_strided_slice %35 {offsets = [0, 0], sizes = [14, 32], strides = [1, 1]} : vector<14x96xf32> to vector<14x32xf32>
    %37 = tpu.transpose %36, [1, 0] : vector<14x32xf32> -> vector<32x14xf32>
    %38 = vector.shape_cast %37 : vector<32x14xf32> to vector<4x8x14xf32>
    %39 = tpu.transpose %38, [0, 2, 1] : vector<4x8x14xf32> -> vector<4x14x8xf32>
    %40 = arith.truncf %39 : vector<4x14x8xf32> to vector<4x14x8xbf16>
    %41 = vector.extract_strided_slice %35 {offsets = [0, 32], sizes = [14, 32], strides = [1, 1]} : vector<14x96xf32> to vector<14x32xf32>
    %42 = tpu.transpose %41, [1, 0] : vector<14x32xf32> -> vector<32x14xf32>
    %43 = vector.shape_cast %42 : vector<32x14xf32> to vector<4x8x14xf32>
    %44 = tpu.transpose %43, [0, 2, 1] : vector<4x8x14xf32> -> vector<4x14x8xf32>
    %45 = arith.truncf %44 : vector<4x14x8xf32> to vector<4x14x8xbf16>
    %46 = vector.extract_strided_slice %35 {offsets = [0, 64], sizes = [14, 32], strides = [1, 1]} : vector<14x96xf32> to vector<14x32xf32>
    %47 = tpu.transpose %46, [1, 0] : vector<14x32xf32> -> vector<32x14xf32>
    %48 = vector.shape_cast %47 : vector<32x14xf32> to vector<4x8x14xf32>
    %49 = tpu.transpose %48, [0, 2, 1] : vector<4x8x14xf32> -> vector<4x14x8xf32>
    %50 = arith.truncf %49 : vector<4x14x8xf32> to vector<4x14x8xbf16>
    "tpu.trace_start"() <{level = 10 : i32, message = "hqd,hkd->hqk"}> : () -> ()
    %cst_19 = arith.constant dense<0.000000e+00> : vector<4x14x14xf32>
    %51 = tpu.matmul %40, %45, %cst_19 {dimension_numbers = #tpu.dot_dimension_numbers<[2], [2], [1], [1], [0, 0, 0, 1, 1, 1], [0], [0]>} : vector<4x14x8xbf16>, vector<4x14x8xbf16>, vector<4x14x14xf32> -> vector<4x14x14xf32>
    "tpu.trace_stop"() : () -> ()
    %cst_20 = arith.constant dense<0xFF800000> : vector<4x14xf32>
    %52 = vector.multi_reduction <maximumf>, %51, %cst_20 [2] : vector<4x14x14xf32> to vector<4x14xf32>
    %53 = vector.shape_cast %52 : vector<4x14xf32> to vector<4x14x1xf32>
    %54 = vector.broadcast %53 : vector<4x14x1xf32> to vector<4x14x14xf32>
    %55 = arith.subf %51, %54 : vector<4x14x14xf32>
    %56 = math.exp %55 : vector<4x14x14xf32>
    %cst_21 = arith.constant dense<0.000000e+00> : vector<4x14xf32>
    %57 = vector.multi_reduction <add>, %56, %cst_21 [2] : vector<4x14x14xf32> to vector<4x14xf32>
    %58 = vector.shape_cast %57 : vector<4x14xf32> to vector<4x14x1xf32>
    %59 = tpu.reciprocal %58 {approx = true} : vector<4x14x1xf32> -> vector<4x14x1xf32>
    %60 = vector.broadcast %59 : vector<4x14x1xf32> to vector<4x14x14xf32>
    %61 = arith.mulf %56, %60 : vector<4x14x14xf32>
    %62 = arith.truncf %61 : vector<4x14x14xf32> to vector<4x14x14xbf16>
    "tpu.trace_start"() <{level = 10 : i32, message = "hqk,hkd->hqd"}> : () -> ()
    %cst_22 = arith.constant dense<0.000000e+00> : vector<4x14x8xf32>
    %63 = tpu.matmul %62, %50, %cst_22 {dimension_numbers = #tpu.dot_dimension_numbers<[2], [1], [1], [2], [0, 0, 0, 1, 1, 2], [0], [0]>} : vector<4x14x14xbf16>, vector<4x14x8xbf16>, vector<4x14x8xf32> -> vector<4x14x8xf32>
    "tpu.trace_stop"() : () -> ()
    %64 = tpu.transpose %63, [0, 2, 1] : vector<4x14x8xf32> -> vector<4x8x14xf32>
    %65 = vector.shape_cast %64 : vector<4x8x14xf32> to vector<32x14xf32>
    %66 = tpu.transpose %65, [1, 0] : vector<32x14xf32> -> vector<14x32xf32>
    %67 = arith.truncf %66 : vector<14x32xf32> to vector<14x32xbf16>
    %c0_23 = arith.constant 0 : index
    %c0_24 = arith.constant 0 : index
    %c0_25 = arith.constant 0 : index
    %68 = vector.load %arg7[%c0_23, %c0_24, %c0_25] : memref<1x32x32xbf16, #tpu.memory_space<vmem>>, vector<1x32x32xbf16>
    %69 = vector.shape_cast %68 : vector<1x32x32xbf16> to vector<32x32xbf16>
    %cst_26 = arith.constant dense<0.000000e+00> : vector<14x32xf32>
    %70 = tpu.matmul %67, %69, %cst_26 {dimension_numbers = #tpu.dot_dimension_numbers<[1], [0], [0], [1], [0, 0, 1, 1], [], []>} : vector<14x32xbf16>, vector<32x32xbf16>, vector<14x32xf32> -> vector<14x32xf32>
    %c0_27 = arith.constant 0 : index
    %c0_28 = arith.constant 0 : index
    %c0_29 = arith.constant 0 : index
    %71 = vector.load %arg8[%c0_27, %c0_28, %c0_29] : memref<1x1x32xf32, #tpu.memory_space<vmem>>, vector<1x1x32xf32>
    %72 = vector.shape_cast %71 : vector<1x1x32xf32> to vector<1x32xf32>
    %73 = vector.broadcast %72 : vector<1x32xf32> to vector<14x32xf32>
    %74 = arith.addf %70, %73 : vector<14x32xf32>
    %75 = arith.addf %3, %74 : vector<14x32xf32>
    %c0_30 = arith.constant 0 : index
    %c0_31 = arith.constant 0 : index
    %c0_32 = arith.constant 0 : index
    %76 = vector.load %arg9[%c0_30, %c0_31, %c0_32] : memref<1x1x32xf32, #tpu.memory_space<vmem>>, vector<1x1x32xf32>
    %77 = vector.shape_cast %76 : vector<1x1x32xf32> to vector<1x32xf32>
    %c0_33 = arith.constant 0 : index
    %c0_34 = arith.constant 0 : index
    %c0_35 = arith.constant 0 : index
    %78 = vector.load %arg10[%c0_33, %c0_34, %c0_35] : memref<1x1x32xf32, #tpu.memory_space<vmem>>, vector<1x1x32xf32>
    %79 = vector.shape_cast %78 : vector<1x1x32xf32> to vector<1x32xf32>
    %cst_36 = arith.constant dense<0.000000e+00> : vector<14xf32>
    %80 = vector.multi_reduction <add>, %75, %cst_36 [1] : vector<14x32xf32> to vector<14xf32>
    %81 = vector.shape_cast %80 : vector<14xf32> to vector<14x1xf32>
    %cst_37 = arith.constant 3.200000e+01 : f32
    %82 = vector.broadcast %cst_37 : f32 to vector<14x1xf32>
    %83 = arith.divf %81, %82 : vector<14x1xf32>
    %84 = vector.broadcast %83 : vector<14x1xf32> to vector<14x32xf32>
    %85 = arith.subf %75, %84 : vector<14x32xf32>
    %86 = arith.mulf %85, %85 : vector<14x32xf32>
    %cst_38 = arith.constant dense<0.000000e+00> : vector<14xf32>
    %87 = vector.multi_reduction <add>, %86, %cst_38 [1] : vector<14x32xf32> to vector<14xf32>
    %88 = vector.shape_cast %87 : vector<14xf32> to vector<14x1xf32>
    %cst_39 = arith.constant 3.200000e+01 : f32
    %89 = vector.broadcast %cst_39 : f32 to vector<14x1xf32>
    %90 = arith.divf %88, %89 : vector<14x1xf32>
    %cst_40 = arith.constant 9.99999974E-6 : f32
    %91 = vector.broadcast %cst_40 : f32 to vector<14x1xf32>
    %92 = arith.addf %90, %91 : vector<14x1xf32>
    %93 = math.rsqrt %92 : vector<14x1xf32>
    %94 = vector.broadcast %93 : vector<14x1xf32> to vector<14x32xf32>
    %95 = arith.mulf %85, %94 : vector<14x32xf32>
    %96 = vector.broadcast %77 : vector<1x32xf32> to vector<14x32xf32>
    %97 = arith.mulf %95, %96 : vector<14x32xf32>
    %98 = vector.broadcast %79 : vector<1x32xf32> to vector<14x32xf32>
    %99 = arith.addf %97, %98 : vector<14x32xf32>
    %100 = arith.truncf %99 : vector<14x32xf32> to vector<14x32xbf16>
    %c0_41 = arith.constant 0 : index
    %c0_42 = arith.constant 0 : index
    %c0_43 = arith.constant 0 : index
    %101 = vector.load %arg11[%c0_41, %c0_42, %c0_43] : memref<1x32x128xbf16, #tpu.memory_space<vmem>>, vector<1x32x128xbf16>
    %102 = vector.shape_cast %101 : vector<1x32x128xbf16> to vector<32x128xbf16>
    %cst_44 = arith.constant dense<0.000000e+00> : vector<14x128xf32>
    %103 = tpu.matmul %100, %102, %cst_44 {dimension_numbers = #tpu.dot_dimension_numbers<[1], [0], [0], [1], [0, 0, 1, 1], [], []>} : vector<14x32xbf16>, vector<32x128xbf16>, vector<14x128xf32> -> vector<14x128xf32>
    %c0_45 = arith.constant 0 : index
    %c0_46 = arith.constant 0 : index
    %c0_47 = arith.constant 0 : index
    %104 = vector.load %arg12[%c0_45, %c0_46, %c0_47] : memref<1x1x128xf32, #tpu.memory_space<vmem>>, vector<1x1x128xf32>
    %105 = vector.shape_cast %104 : vector<1x1x128xf32> to vector<1x128xf32>
    %106 = vector.broadcast %105 : vector<1x128xf32> to vector<14x128xf32>
    %107 = arith.addf %103, %106 : vector<14x128xf32>
    %108 = arith.mulf %107, %107 : vector<14x128xf32>
    %109 = arith.mulf %107, %108 : vector<14x128xf32>
    %cst_48 = arith.constant 4.471500e-02 : f32
    %110 = vector.broadcast %cst_48 : f32 to vector<14x128xf32>
    %111 = arith.mulf %110, %109 : vector<14x128xf32>
    %112 = arith.addf %107, %111 : vector<14x128xf32>
    %cst_49 = arith.constant 0.797884583 : f32
    %113 = vector.broadcast %cst_49 : f32 to vector<14x128xf32>
    %114 = arith.mulf %113, %112 : vector<14x128xf32>
    %115 = math.tanh %114 : vector<14x128xf32>
    %cst_50 = arith.constant 1.000000e+00 : f32
    %116 = vector.broadcast %cst_50 : f32 to vector<14x128xf32>
    %117 = arith.addf %116, %115 : vector<14x128xf32>
    %cst_51 = arith.constant 5.000000e-01 : f32
    %118 = vector.broadcast %cst_51 : f32 to vector<14x128xf32>
    %119 = arith.mulf %118, %117 : vector<14x128xf32>
    %120 = arith.mulf %107, %119 : vector<14x128xf32>
    %121 = arith.truncf %120 : vector<14x128xf32> to vector<14x128xbf16>
    %c0_52 = arith.constant 0 : index
    %c0_53 = arith.constant 0 : index
    %c0_54 = arith.constant 0 : index
    %122 = vector.load %arg13[%c0_52, %c0_53, %c0_54] : memref<1x128x32xbf16, #tpu.memory_space<vmem>>, vector<1x128x32xbf16>
    %123 = vector.shape_cast %122 : vector<1x128x32xbf16> to vector<128x32xbf16>
    %cst_55 = arith.constant dense<0.000000e+00> : vector<14x32xf32>
    %124 = tpu.matmul %121, %123, %cst_55 {dimension_numbers = #tpu.dot_dimension_numbers<[1], [0], [0], [1], [0, 0, 1, 1], [], []>} : vector<14x128xbf16>, vector<128x32xbf16>, vector<14x32xf32> -> vector<14x32xf32>
    %c0_56 = arith.constant 0 : index
    %c0_57 = arith.constant 0 : index
    %c0_58 = arith.constant 0 : index
    %125 = vector.load %arg14[%c0_56, %c0_57, %c0_58] : memref<1x1x32xf32, #tpu.memory_space<vmem>>, vector<1x1x32xf32>
    %126 = vector.shape_cast %125 : vector<1x1x32xf32> to vector<1x32xf32>
    %127 = vector.broadcast %126 : vector<1x32xf32> to vector<14x32xf32>
    %128 = arith.addf %124, %127 : vector<14x32xf32>
    %129 = arith.addf %75, %128 : vector<14x32xf32>
    %c0_59 = arith.constant 0 : index
    %c0_60 = arith.constant 0 : index
    %130 = vector.load %arg16[%c0_59, %c0_60] : memref<14x32xf32, #tpu.memory_space<vmem>>, vector<14x32xf32>
    tpu.vector_store %arg16[%c0_59, %c0_60], %129 {strides = array<i32>} : memref<14x32xf32, #tpu.memory_space<vmem>>, vector<14x32xf32>,
    %c1_i32 = arith.constant 1 : i32
    %131 = arith.cmpi eq, %arg1, %c1_i32 : i32
    %132 = arith.extui %131 : i1 to i32
    %c0_i32_61 = arith.constant 0 : i32
    %133 = arith.cmpi ne, %132, %c0_i32_61 : i32
    scf.if %133 {
      %c0_62 = arith.constant 0 : index
      %c0_63 = arith.constant 0 : index
      %c0_64 = arith.constant 0 : index
      %134 = vector.load %arg15[%c0_62, %c0_63, %c0_64] : memref<1x14x32xf32, #tpu.memory_space<vmem>>, vector<1x14x32xf32>
      %135 = vector.shape_cast %134 : vector<1x14x32xf32> to vector<14x32xf32>
      %136 = vector.shape_cast %129 : vector<14x32xf32> to vector<1x14x32xf32>
      tpu.vector_store %arg15[%c0_62, %c0_63, %c0_64], %136 {strides = array<i32>} : memref<1x14x32xf32, #tpu.memory_space<vmem>>, vector<1x14x32xf32>,
    } else {
    }
    return
  }
  func.func @transform_0(%arg0: i32, %arg1: i32) -> (i32, i32, i32) {
    %c0_i32 = arith.constant 0 : i32
    %c0_i32_0 = arith.constant 0 : i32
    %c0_i32_1 = arith.constant 0 : i32
    return %arg0, %c0_i32, %c0_i32_0 : i32, i32, i32
  }
  func.func @transform_1(%arg0: i32, %arg1: i32) -> (i32, i32, i32) {
    %c0_i32 = arith.constant 0 : i32
    %c0_i32_0 = arith.constant 0 : i32
    %c0_i32_1 = arith.constant 0 : i32
    return %arg1, %c0_i32, %c0_i32_0 : i32, i32, i32
  }
  func.func @transform_2(%arg0: i32, %arg1: i32) -> (i32, i32, i32) {
    %c0_i32 = arith.constant 0 : i32
    %c0_i32_0 = arith.constant 0 : i32
    %c0_i32_1 = arith.constant 0 : i32
    return %arg1, %c0_i32, %c0_i32_0 : i32, i32, i32
  }
  func.func @transform_3(%arg0: i32, %arg1: i32) -> (i32, i32, i32) {
    %c0_i32 = arith.constant 0 : i32
    %c0_i32_0 = arith.constant 0 : i32
    %c0_i32_1 = arith.constant 0 : i32
    return %arg1, %c0_i32, %c0_i32_0 : i32, i32, i32
  }
  func.func @transform_4(%arg0: i32, %arg1: i32) -> (i32, i32, i32) {
    %c0_i32 = arith.constant 0 : i32
    %c0_i32_0 = arith.constant 0 : i32
    %c0_i32_1 = arith.constant 0 : i32
    return %arg1, %c0_i32, %c0_i32_0 : i32, i32, i32
  }
  func.func @transform_5(%arg0: i32, %arg1: i32) -> (i32, i32, i32) {
    %c0_i32 = arith.constant 0 : i32
    %c0_i32_0 = arith.constant 0 : i32
    %c0_i32_1 = arith.constant 0 : i32
    return %arg1, %c0_i32, %c0_i32_0 : i32, i32, i32
  }
  func.func @transform_6(%arg0: i32, %arg1: i32) -> (i32, i32, i32) {
    %c0_i32 = arith.constant 0 : i32
    %c0_i32_0 = arith.constant 0 : i32
    %c0_i32_1 = arith.constant 0 : i32
    return %arg1, %c0_i32, %c0_i32_0 : i32, i32, i32
  }
  func.func @transform_7(%arg0: i32, %arg1: i32) -> (i32, i32, i32) {
    %c0_i32 = arith.constant 0 : i32
    %c0_i32_0 = arith.constant 0 : i32
    %c0_i32_1 = arith.constant 0 : i32
    return %arg1, %c0_i32, %c0_i32_0 : i32, i32, i32
  }
  func.func @transform_8(%arg0: i32, %arg1: i32) -> (i32, i32, i32) {
    %c0_i32 = arith.constant 0 : i32
    %c0_i32_0 = arith.constant 0 : i32
    %c0_i32_1 = arith.constant 0 : i32
    return %arg1, %c0_i32, %c0_i32_0 : i32, i32, i32
  }
  func.func @transform_9(%arg0: i32, %arg1: i32) -> (i32, i32, i32) {
    %c0_i32 = arith.constant 0 : i32
    %c0_i32_0 = arith.constant 0 : i32
    %c0_i32_1 = arith.constant 0 : i32
    return %arg1, %c0_i32, %c0_i32_0 : i32, i32, i32
  }
  func.func @transform_10(%arg0: i32, %arg1: i32) -> (i32, i32, i32) {
    %c0_i32 = arith.constant 0 : i32
    %c0_i32_0 = arith.constant 0 : i32
    %c0_i32_1 = arith.constant 0 : i32
    return %arg1, %c0_i32, %c0_i32_0 : i32, i32, i32
  }
  func.func @transform_11(%arg0: i32, %arg1: i32) -> (i32, i32, i32) {
    %c0_i32 = arith.constant 0 : i32
    %c0_i32_0 = arith.constant 0 : i32
    %c0_i32_1 = arith.constant 0 : i32
    return %arg1, %c0_i32, %c0_i32_0 : i32, i32, i32
  }
  func.func @transform_12(%arg0: i32, %arg1: i32) -> (i32, i32, i32) {
    %c0_i32 = arith.constant 0 : i32
    %c0_i32_0 = arith.constant 0 : i32
    %c0_i32_1 = arith.constant 0 : i32
    return %arg1, %c0_i32, %c0_i32_0 : i32, i32, i32
  }
  func.func @transform_13(%arg0: i32, %arg1: i32) -> (i32, i32, i32) {
    %c0_i32 = arith.constant 0 : i32
    %c0_i32_0 = arith.constant 0 : i32
    %c0_i32_1 = arith.constant 0 : i32
    return %arg0, %c0_i32, %c0_i32_0 : i32, i32, i32
  }
}

</mosaic_0001>

<bundles_post_ra>
// kernel: tpu_custom_call.1
= control target key start
LH: loop header
LB: loop body
LE: loop exit
PB: predicated region body
PF: predicated region fallthrough
CT: control target
= control target key end

     0   :  { %s2900_s25 = smov 0   ;;  %s2902_s26 = smov 0   ;;  %s3227_s0 = inlined_call_operand.vmem [shape: f32[2,14,32], index: 0, kind: input, shape index: {}]   ;;  %s3228_s1 = inlined_call_operand.vmem [shape: f32[2,1,32], index: 1, kind: input, shape index: {}]   ;;  %s3229_s2 = inlined_call_operand.vmem [shape: f32[2,1,32], index: 2, kind: input, shape index: {}]   ;;  %s3230_s3 = inlined_call_operand.vmem [shape: bf16[2,32,96], index: 3, kind: input, shape index: {}]   ;;  %s3231_s4 = inlined_call_operand.vmem [shape: f32[2,1,96], index: 4, kind: input, shape index: {}]   ;;  %s3232_s5 = inlined_call_operand.vmem [shape: bf16[2,32,32], index: 5, kind: input, shape index: {}]   ;;  %s3233_s6 = inlined_call_operand.vmem [shape: f32[2,1,32], index: 6, kind: input, shape index: {}]   ;;  %s3234_s7 = inlined_call_operand.vmem [shape: f32[2,1,32], index: 7, kind: input, shape index: {}]   ;;  %s3235_s8 = inlined_call_operand.vmem [shape: f32[2,1,32], index: 8, kind: input, shape index: {}]   ;;  %s3236_s9 = inlined_call_operand.vmem [shape: bf16[2,32,128], index: 9, kind: input, shape index: {}]   ;;  %s3237_s10 = inlined_call_operand.vmem [shape: f32[2,1,128], index: 10, kind: input, shape index: {}]   ;;  %s3238_s11 = inlined_call_operand.vmem [shape: bf16[2,128,32], index: 11, kind: input, shape index: {}]   ;;  %s3239_s12 = inlined_call_operand.vmem [shape: f32[2,1,32], index: 12, kind: input, shape index: {}]   ;;  %s3240_s13 = inlined_call_operand.vmem [shape: f32[2,14,32], index: 13, kind: output, shape index: {}]  }
   0x1   :  { %3245 = sst [smem:[#allocation9_spill]] %s3227_s0  ;;  %s2904_s27 = smov 0  }
   0x2   :  { %3246 = sst [smem:[#allocation10_spill]] %s3229_s2  ;;  %s2906_s28 = smov 0  }
   0x3   :  { %3247 = sst [smem:[#allocation11_spill]] %s3230_s3  ;;  %s2908_s29 = smov 0  }
   0x4   :  { %3248 = sst [smem:[#allocation12_spill]] %s3232_s5 }
   0x5   :  { %3249 = sst [smem:[#allocation13_spill]] %s3240_s13 }
   0x6 LB: > { %3250 = sst [smem:[#allocation3_spill]] %s2808_s25  ;;  %s32_s30 = sadd.s32 1, %s2816_s27  ;;  %s2824_s29 = sphi %s2908_s29, %s23_s29   ;;  %s2820_s28 = sphi %s2906_s28, %s3274_s28   ;;  %s2816_s27 = sphi %s2904_s27, %s3273_s27   ;;  %s2812_s26 = sphi %s2902_s26, %s3272_s26   ;;  %s2808_s25 = sphi %s2900_s25, %s3271_s25  }
   0x7   : > { %3251 = sst [smem:[#allocation4_spill]] %s2816_s27  ;;  %s35_s14 = sadd.s32 1, %s2820_s28 }
   0x8   : > { %3252 = sst [smem:[#allocation5_spill]] %s2820_s28  ;;  %p33_p0 = scmp.ge.s32.totalorder %s32_s30, 2 }
   0x9   : > { %3253 = sst [smem:[#allocation6_spill]] %s2824_s29  ;;  %p2424_p1 = scmp.ge.s32.totalorder %s2824_s29, 1 }
   0xa   : > { %p503_p2 = scmp.lt.s32.totalorder %s2824_s29, 5  ;;  %s3276_s30 = smov (%p33_p0, %s32_s30), 0 }
   0xb   : > { %3254 = sst [smem:[#allocation7_spill]] %s3276_s30  ;;  %s3278_s14 = smov (!%p33_p0, %s35_s14), %s2820_s28 }
   0xc   : > { %p504_p3 = pnand %p2424_p1, %p503_p2  ;;  %p37_p4 = scmp.ge.s32.totalorder %s3278_s14, 2 }
   0xd   : > { %p591_p5 = scmp.lt.s32.totalorder (!%p504_p3), %s2812_s26, 1  ;;  %p596_p6 = scmp.lt.s32.totalorder (!%p504_p3), %s2808_s25, 1 }
   0xe   : > { %s3280_s14 = smov (%p37_p4, %s3278_s14), 0  ;;  %507 = sbr.rel (%p504_p3) target bundleno = 2958 (0xb8e), region = 72 }
   0xf   : > { %3255 = sst [smem:[#allocation8_spill]] %s3280_s14 }
  0x10   : > { %s3256_s0 = sld [smem:[#allocation9_spill]] (!%p504_p3) }
  0x11   : > { %s3258_s3 = sld [smem:[#allocation11_spill]] (!%p504_p3) }
  0x12   : > { %s3259_s5 = sld [smem:[#allocation12_spill]] (!%p504_p3) }
  0x13   : > { %s3282_s26 = smov (!%p591_p5, %s2812_s26), 1 }
  0x14   : > { %s2934_s15 = scalar_select %p596_p6, %s2808_s25, 1 }
  0x15   : > { %s2474_s16 = sshll.u32 %s3282_s26, 4 }
  0x16   : > { %s595_s19 = scalar_lea.vmem %s3256_s0, %s2474_s16  ;;  %s2475_s30 = sshll.u32 %s2934_s15, 4 }
  0x17   : > { %s2951_s29 = scalar_lea.vmem %s3258_s3, %s2475_s30  ;;  %s2977_s26 = scalar_lea.vmem %s3236_s9, %s2475_s30 }
  0x18   : > { %s2960_s0 = scalar_lea.vmem %s3259_s5, %s2475_s30  ;;  %s631_s13 = scalar_lea.vmem %s3237_s10, %s2934_s15 }
  0x19   : > { %s2478_s5 = sshll.u32 %s2934_s15, 6  ;;  %s639_s23 = scalar_lea.vmem %s3239_s12, %s2934_s15 }
  0x1a   : > { %s2991_s22 = scalar_lea.vmem %s3238_s11, %s2478_s5  ;;  %s3260_s3 = sld [smem:[#allocation13_spill]] }
  0x1b   : > { %s3261_s30 = sld [smem:[#allocation3_spill]] }
  0x20   : > { %s2996_s2 = scalar_lea.vmem %s3260_s3, %s2474_s16 }
  0x21   : > { %p2437_p7 = scmp.ne.s32.totalorder %s3261_s30, 0 }
  0x23   : > { %649 = sbr.rel (%p2437_p7) target bundleno = 43 (0x2b), region = 76 }
  0x28   : > { %v650_v0 = vld [vmem:[%s595_s19] sm:$0xff]  ;;  %vm652_vm0 = vcmask 261120   ;;  %v651_v1 = vld [vmem:[%s595_s19 + $0x8] sm:$0x3f]  ;;  %vm654_vm1 = vcmask 259072  }
  0x29   : > { %653 = vst.msk [vmem:[#allocation2] sm:$0xff] %vm652_vm0, %v650_v0 }
  0x2a   : > { %655 = vst.msk [vmem:[#allocation2 + $0x8] sm:$0x3f] %vm654_vm1, %v651_v1 }
  0x2b PF: > { %vm660_vm2 = vcmask 261120   ;;  %vm664_vm3 = vcmask 259072   ;;  %v2728_v16 = vld [vmem:[%s2951_s29 + $0x8] sm:$0xff]   ;;  %v2826_v17 = vmov 0.0   ;;  %vm2827_vm4 = vmmov 0   ;;  %v2729_v18 = vld [vmem:[%s2951_s29] sm:$0xff]   ;;  %s3262_s29 = scalar_lea.vmem %s3228_s1, %s2934_s15  ;;  %s3265_s21 = scalar_lea.vmem %s3231_s4, %s2934_s15 }
  0x2c   : > { %2514 = vmatprep.subr.bf16.mxu0 %v2826_v17  ;;  %2518 = vmatprep.mubr.msk.bf16.mxu0 %vm2827_vm4, %v2826_v17  ;;  %v2438_v27 = vld [vmem:[%s3262_s29] ss:$0 sm:$0xff]  ;;  %s3263_s25 = sld [smem:[#allocation10_spill]]  ;;  %s2828_s14 = smov 96   ;;  %vm1279_vm5 = vcmask 64512   ;;  %vm1468_vm6 = vcmask 113664  }
  0x2d   : > { %2515 = vmatpush3.bf16.msra.mxu0 %v2728_v16  ;;  %2534 = vmatprep.subr.bf16.mxu1 %v2826_v17  ;;  %v2440_v36 = vld [vmem:[%s3265_s21] ss:$0 sm:$0xff]  ;;  %s2829_s24 = smov 64   ;;  %vm1472_vm7 = vcmask 111616   ;;  %vm1565_vm8 = vcmask 1046528   ;;  %s3266_s28 = scalar_lea.vmem %s3233_s6, %s2934_s15 }
  0x2e   : > { %2516 = vmatprep.subr.bf16.mxu0 %v2826_v17  ;;  %2536 = vmatprep.mubr.msk.bf16.mxu1 %vm2827_vm4, %v2826_v17  ;;  %s3268_s16 = scalar_lea.vmem %s3235_s8, %s2934_s15 }
  0x30   : > { %v2999_v2 = vld [vmem:[#allocation2] sm:$0xff] }
  0x31   : > { %v3001_v3 = vld [vmem:[#allocation2 + $0x8] sm:$0x3f]  ;;  %v661_v4 = vsel %vm660_vm2, %v2999_v2, 0.0  ;;  %2517 = vmatpush3.bf16.msra.mxu0 %v2729_v18 }
  0x32   : > { %v665_v5 = vsel %vm664_vm3, %v3001_v3, 0.0  ;;  %662 = vadd.xlane.f32.xlu0 %v661_v4  ;;  %2522 = vmatprep.subr.bf16.mxu0 %v2826_v17  ;;  %s3264_s17 = scalar_lea.vmem %s3263_s25, %s2934_s15 }
  0x33   : > { %v2439_v31 = vld [vmem:[%s3264_s17] ss:$0 sm:$0xff]  ;;  %s3269_s17 = sld [smem:[#allocation3_spill]] }
  0x36   : > { %666 = vadd.xlane.f32.xlu0 %v665_v5 }
  0x39   : > { %p2471_p8 = scmp.ne.s32.totalorder %s3269_s17, 1 }
  0xbb   : > { %v663_v6 = vpop.xlane.xlu0 %662 }
  0xbc   : > { %v669_v7 = vmul.f32 0.03125, %v663_v6 }
  0xbe   : > { %v671_v8 = vsub.f32 %v2999_v2, %v669_v7 }
  0xbf   : > { %v667_v9 = vpop.xlane.xlu0 %666 }
  0xc0   : > { %v670_v10 = vmul.f32 0.03125, %v667_v9  ;;  %v673_v11 = vmul.f32 %v671_v8, %v671_v8 }
  0xc2   : > { %v672_v12 = vsub.f32 %v3001_v3, %v670_v10  ;;  %v675_v13 = vsel %vm660_vm2, %v673_v11, 0.0 }
  0xc3   : > { %676 = vadd.xlane.f32.xlu1 %v675_v13 }
  0xc4   : > { %v674_v14 = vmul.f32 %v672_v12, %v672_v12 }
  0xc6   : > { %v678_v15 = vsel %vm664_vm3, %v674_v14, 0.0 }
  0xc7   : > { %679 = vadd.xlane.f32.xlu1 %v678_v15 }
 0x14c   : > { %v677_v19 = vpop.xlane.xlu1 %676 }
 0x14d   : > { %v681_v20 = vmul.f32 0.03125, %v677_v19 }
 0x14f   : > { %v683_v21 = vadd.f32 1e-05, %v681_v20 }
 0x150   : > { %v680_v22 = vpop.xlane.xlu1 %679 }
 0x151   : > { %2742 = vrsqrt.f32 %v683_v21  ;;  %v682_v23 = vmul.f32 0.03125, %v680_v22 }
 0x153   : > { %v684_v24 = vadd.f32 1e-05, %v682_v23 }
 0x155   : > { %2744 = vrsqrt.f32 %v684_v24 }
 0x15e   : > { %v2743_v25 = vpop.eup %2742 }
 0x15f   : > { %v687_v26 = vmul.f32 %v2743_v25, %v671_v8 }
 0x161   : > { %v695_v30 = vmul.f32 %v2438_v27, %v687_v26 }
 0x162   : > { %v2745_v28 = vpop.eup %2744 }
 0x163   : > { %v688_v29 = vmul.f32 %v2745_v28, %v672_v12  ;;  %v703_v33 = vadd.f32 %v2439_v31, %v695_v30 }
 0x165   : > { %v696_v32 = vmul.f32 %v2438_v27, %v688_v29 }
 0x167   : > { %v704_v34 = vadd.f32 %v2439_v31, %v696_v32 }
 0x169   : > { %v705_v35 = vpack.c.bf16 %v704_v34, %v703_v33 }
 0x16b   : > { %2519 = vmatmul.mubr.msk.bf16.vlgmr.msra.gmra.mxu0 %vm660_vm2, %v705_v35 }
 0x16c   : > { %2524 = vmatprep.mubr.msk.bf16.mxu0 %vm2827_vm4, %v2826_v17 }
 0x22b   : > { %v766_v37 = vpop.f32.mrf.mxu0 }
 0x22c   : > { %v767_v38 = vadd.f32 %v2440_v36, %v766_v37 }
 0x22d   : > { %v2520_v39 = vpop.f32.mrf.mxu0 }
 0x22e   : > { %939 = vrot.lane.b32.xlu0 %v767_v38, %s2828_s14 }
 0x22f   : > { %v769_v40 = vpop.f32.mrf.mxu0 }
 0x230   : > { %v3039_v41 = vadd.f32 %v2440_v36, %v769_v40 }
 0x231   : > { %v2521_v42 = vpop.f32.mrf.mxu0 }
 0x232   : > { %941 = vrot.lane.b32.xlu1 %v3039_v41, %s2828_s14 }
 0x24c   : > { %773 = vxpose.xlu0.b32.start [1/2] (short) (narrow) %v767_v38, 32 }
 0x250   : > { %774 = vxpose.xlu0.b32.end [2/2] (short) (narrow) %v3039_v41, 32 }
 0x2a0   : > { %v940_v43 = vpop.permute.xlu0 %939 }
 0x2a1   : > { %945 = vxpose.xlu1.b32.start [1/2] (short) (narrow) %v940_v43, 32 }
 0x2a4   : > { %v942_v44 = vpop.permute.xlu1 %941 }
 0x2a5   : > { %946 = vxpose.xlu1.b32.end [2/2] (short) (narrow) %v942_v44, 32 }
 0x2c8   : > { %v789_v45 = vpop.trf.xlu0 }
 0x2cc   : > { %v790_v46 = vpop.trf.xlu0 }
 0x2d0   : > { %v791_v47 = vpop.trf.xlu0 }
 0x2d4   : > { %v792_v51 = vpop.trf.xlu0 }
 0x2d5   : > { %v2674_v53 = vpack.i.bf16 %v792_v51, %v791_v47 }
 0x31d   : > { %v961_v48 = vpop.trf.xlu1 }
 0x31e   : > { %977 = vxpose.xlu0.b32.start.end [1/1] (short) (narrow) %v961_v48, 16 }
 0x321   : > { %v962_v49 = vpop.trf.xlu1 }
 0x322   : > { %v2650_v50 = vpack.i.bf16 %v962_v49, %v789_v45 }
 0x324   : > { %2651 = vxpose.xlu1.b32.start.end [1/1] (short) (narrow) %v2650_v50, 16 }
 0x325   : > { %v963_v52 = vpop.trf.xlu1 }
 0x326   : > { %v2662_v54 = vpack.i.bf16 %v790_v46, %v963_v52 }
 0x328   : > { %2663 = vxpose.xlu0.b32.start.end [1/1] (short) (narrow) %v2662_v54, 16 }
 0x329   : > { %2675 = vxpose.xlu1.b32.start.end [1/1] (short) (narrow) %v2674_v53, 16  ;;  %v964_v55 = vpop.trf.xlu1 }
 0x32d   : > { %1073 = vxpose.xlu0.b32.start.end [1/1] (short) (narrow) %v964_v55, 16 }
 0x35a   : > { %1109 = vrot.lane.b32.xlu0 %v767_v38, %s2829_s24 }
 0x39a   : > { %v993_v56 = vpop.trf.xlu0 }
 0x39e   : > { %v994_v57 = vpop.trf.xlu0 }
 0x39f   : > { %v1105_v58 = vpack.c.bf16 %v994_v57, %v993_v56 }
 0x3a0   : > { %v2652_v59 = vpop.trf.xlu1 }
 0x3a1   : > { %v1284_v60 = vsel %vm1279_vm5, %v1105_v58, 0  ;;  %v2656_v63 = vunpack.i.h.bf16 %v2652_v59  ;;  %v2653_v1 = vunpack.i.l.bf16 %v2652_v59 }
 0x3a2   : > { %2523 = vmatpush3.bf16.xpose.msra.mxu0 %v1284_v60 }
 0x3a3   : > { %2528 = vmatprep.subr.bf16.mxu0 %v2826_v17 }
 0x3a4   : > { %v2664_v61 = vpop.trf.xlu0  ;;  %v2657_v62 = vpop.trf.xlu1 }
 0x3a5   : > { %v2661_v0 = vunpack.i.h.bf16 %v2657_v62  ;;  %v2658_v4 = vunpack.i.l.bf16 %v2657_v62  ;;  %v2665_v11 = vunpack.i.l.bf16 %v2664_v61  ;;  %v2668_v16 = vunpack.i.h.bf16 %v2664_v61 }
 0x3a7   : > { %v1106_v5 = vpack.c.bf16 %v2661_v0, %v2656_v63  ;;  %v933_v6 = vpack.c.bf16 %v2658_v4, %v2653_v1 }
 0x3a8   : > { %v2669_v7 = vpop.trf.xlu0  ;;  %v2676_v8 = vpop.trf.xlu1 }
 0x3a9   : > { %2525 = vmatmul.mubr.msk.bf16.vlgmr.msra.gmra.mxu0 %vm1279_vm5, %v933_v6  ;;  %v1331_v9 = vsel %vm1279_vm5, %v1106_v5, 0  ;;  %v2670_v10 = vunpack.i.l.bf16 %v2669_v7  ;;  %v2673_v12 = vunpack.i.h.bf16 %v2669_v7  ;;  %v2677_v21 = vunpack.i.l.bf16 %v2676_v8 }
 0x3aa   : > { %2529 = vmatpush3.bf16.xpose.msra.mxu0 %v1331_v9  ;;  %2530 = vmatprep.mubr.msk.bf16.mxu0 %vm2827_vm4, %v2826_v17  ;;  %v2680_v25 = vunpack.i.h.bf16 %v2676_v8 }
 0x3ab   : > { %2540 = vmatprep.subr.bf16.mxu0 %v2826_v17  ;;  %v1107_v15 = vpack.c.bf16 %v2670_v10, %v2665_v11  ;;  %v934_v19 = vpack.c.bf16 %v2673_v12, %v2668_v16 }
 0x3ac   : > { %v1089_v13 = vpop.trf.xlu0  ;;  %v2681_v14 = vpop.trf.xlu1 }
 0x3ad   : > { %v1378_v18 = vsel %vm1279_vm5, %v1107_v15, 0  ;;  %v2682_v22 = vunpack.i.l.bf16 %v2681_v14  ;;  %v2685_v26 = vunpack.i.h.bf16 %v2681_v14 }
 0x3ae   : > { %2535 = vmatpush3.bf16.xpose.msra.mxu1 %v1378_v18 }
 0x3af   : > { %2546 = vmatprep.subr.bf16.mxu1 %v2826_v17  ;;  %v935_v27 = vpack.c.bf16 %v2682_v22, %v2677_v21  ;;  %v936_v28 = vpack.c.bf16 %v2685_v26, %v2680_v25 }
 0x3b0   : > { %v1090_v20 = vpop.trf.xlu0 }
 0x3b1   : > { %v1108_v23 = vpack.c.bf16 %v1090_v20, %v1089_v13  ;;  %2531 = vmatmul.mubr.msk.bf16.vlgmr.msra.gmra.mxu0 %vm1279_vm5, %v934_v19 }
 0x3b2   : > { %2542 = vmatprep.mubr.msk.bf16.mxu0 %vm2827_vm4, %v2826_v17 }
 0x3b3   : > { %v1425_v24 = vsel %vm1279_vm5, %v1108_v23, 0 }
 0x3b4   : > { %2541 = vmatpush3.bf16.xpose.msra.mxu0 %v1425_v24 }
 0x3b5   : > { %2552 = vmatprep.subr.bf16.mxu0 %v2826_v17  ;;  %2537 = vmatmul.mubr.msk.bf16.vlgmr.msra.gmra.mxu1 %vm1279_vm5, %v935_v27 }
 0x3b6   : > { %2548 = vmatprep.mubr.msk.bf16.mxu1 %vm2827_vm4, %v2826_v17 }
 0x3bb   : > { %2543 = vmatmul.mubr.msk.bf16.vlgmr.msra.gmra.mxu0 %vm1279_vm5, %v936_v28 }
 0x3bc   : > { %2554 = vmatprep.mubr.msk.bf16.mxu0 %vm2827_vm4, %v2826_v17 }
 0x3cc   : > { %v1110_v54 = vpop.permute.xlu0 %1109 }
 0x469   : > { %v1320_v29 = vpop.f32.mrf.mxu0 }
 0x46a   : > { %v1469_v30 = vsel %vm1468_vm6, %v1320_v29, -inf }
 0x46b   : > { %1470 = vmax.xlane.f32.xlu0 %v1469_v30  ;;  %v2526_v31 = vpop.f32.mrf.mxu0 }
 0x46d   : > { %v3065_v32 = vpop.f32.mrf.mxu0 }
 0x46e   : > { %v1473_v33 = vsel %vm1472_vm7, %v3065_v32, -inf }
 0x46f   : > { %1474 = vmax.xlane.f32.xlu1 %v1473_v33  ;;  %v2527_v34 = vpop.f32.mrf.mxu0 }
 0x471   : > { %v3069_v35 = vpop.f32.mrf.mxu0 }
 0x472   : > { %v1476_v36 = vsel %vm1468_vm6, %v3069_v35, -inf }
 0x473   : > { %1477 = vmax.xlane.f32.xlu1 %v1476_v36  ;;  %v2532_v37 = vpop.f32.mrf.mxu0 }
 0x475   : > { %v1370_v38 = vpop.f32.mrf.mxu0  ;;  %v3073_v39 = vpop.f32.mrf.mxu1 }
 0x476   : > { %v1479_v40 = vsel %vm1472_vm7, %v1370_v38, -inf  ;;  %v1482_v42 = vsel %vm1468_vm6, %v3073_v39, -inf }
 0x477   : > { %1480 = vmax.xlane.f32.xlu1 %v1479_v40  ;;  %v2533_v43 = vpop.f32.mrf.mxu0  ;;  %v2538_v44 = vpop.f32.mrf.mxu1  ;;  %1483 = vmax.xlane.f32.xlu0 %v1482_v42 }
 0x479   : > { %v1417_v45 = vpop.f32.mrf.mxu1 }
 0x47a   : > { %v1485_v47 = vsel %vm1472_vm7, %v1417_v45, -inf }
 0x47b   : > { %v1461_v46 = vpop.f32.mrf.mxu0  ;;  %v2539_v49 = vpop.f32.mrf.mxu1  ;;  %1486 = vmax.xlane.f32.xlu1 %v1485_v47 }
 0x47c   : > { %v1488_v48 = vsel %vm1468_vm6, %v1461_v46, -inf }
 0x47d   : > { %1489 = vmax.xlane.f32.xlu0 %v1488_v48  ;;  %v2544_v50 = vpop.f32.mrf.mxu0 }
 0x47f   : > { %v1464_v51 = vpop.f32.mrf.mxu0 }
 0x480   : > { %v1491_v52 = vsel %vm1472_vm7, %v1464_v51, -inf }
 0x481   : > { %1492 = vmax.xlane.f32.xlu1 %v1491_v52  ;;  %v2545_v53 = vpop.f32.mrf.mxu0 }
 0x492   : > { %1111 = vrot.lane.b32.xlu1 %v3039_v41, %s2829_s24 }
 0x4aa   : > { %1115 = vxpose.xlu0.b32.start [1/2] (short) (narrow) %v1110_v54, 32 }
 0x4f4   : > { %v1471_v55 = vpop.xlane.xlu0 %1470 }
 0x4f5   : > { %v1494_v56 = vsub.f32 %v1320_v29, %v1471_v55 }
 0x4f7   : > { %v1502_v57 = vmul.f32 1.442695, %v1494_v56 }
 0x4f8   : > { %v1475_v58 = vpop.xlane.xlu1 %1474 }
 0x4f9   : > { %2746 = vpow2.f32 %v1502_v57  ;;  %v1495_v15 = vsub.f32 %v3065_v32, %v1475_v58 }
 0x4fb   : > { %v1504_v16 = vmul.f32 1.442695, %v1495_v15 }
 0x4fc   : > { %v1478_v59 = vpop.xlane.xlu1 %1477 }
 0x4fd   : > { %v1496_v18 = vsub.f32 %v3069_v35, %v1478_v59 }
 0x4ff   : > { %v1506_v20 = vmul.f32 1.442695, %v1496_v18 }
 0x500   : > { %v1481_v60 = vpop.xlane.xlu1 %1480  ;;  %v1484_v19 = vpop.xlane.xlu0 %1483 }
 0x501   : > { %v1497_v61 = vsub.f32 %v1370_v38, %v1481_v60  ;;  %v1498_v21 = vsub.f32 %v3073_v39, %v1484_v19 }
 0x503   : > { %v1508_v62 = vmul.f32 1.442695, %v1497_v61  ;;  %v1510_v23 = vmul.f32 1.442695, %v1498_v21 }
 0x504   : > { %v1487_v63 = vpop.xlane.xlu1 %1486 }
 0x505   : > { %2748 = vpow2.f32 %v1508_v62  ;;  %v1499_v1 = vsub.f32 %v1417_v45, %v1487_v63 }
 0x506   : > { %v3083_v0 = vpop.eup %2746  ;;  %v1490_v22 = vpop.xlane.xlu0 %1489 }
 0x507   : > { %v1518_v4 = vsel %vm1468_vm6, %v3083_v0, 0.0  ;;  %v1512_v41 = vmul.f32 1.442695, %v1499_v1  ;;  %v1500_v24 = vsub.f32 %v1461_v46, %v1490_v22 }
 0x508   : > { %1519 = vadd.xlane.f32.xlu1 %v1518_v4 }
 0x509   : > { %2750 = vpow2.f32 %v1512_v41  ;;  %v1514_v25 = vmul.f32 1.442695, %v1500_v24 }
 0x50a   : > { %v1493_v5 = vpop.xlane.xlu1 %1492 }
 0x50b   : > { %v1501_v6 = vsub.f32 %v1464_v51, %v1493_v5 }
 0x50d   : > { %v1516_v7 = vmul.f32 1.442695, %v1501_v6 }
 0x50e   : > { %v1112_v8 = vpop.permute.xlu1 %1111 }
 0x50f   : > { %2752 = vpow2.f32 %v1516_v7  ;;  %1116 = vxpose.xlu0.b32.end [2/2] (short) (narrow) %v1112_v8, 32 }
 0x510   : > { %2754 = vpow2.f32 %v1504_v16 }
 0x511   : > { %2756 = vpow2.f32 %v1506_v20 }
 0x512   : > { %v3087_v9 = vpop.eup %2748  ;;  %2758 = vpow2.f32 %v1510_v23 }
 0x513   : > { %v1527_v10 = vsel %vm1472_vm7, %v3087_v9, 0.0  ;;  %2760 = vpow2.f32 %v1514_v25 }
 0x514   : > { %1528 = vadd.xlane.f32.xlu1 %v1527_v10 }
 0x516   : > { %v3091_v11 = vpop.eup %2750 }
 0x517   : > { %v1533_v12 = vsel %vm1472_vm7, %v3091_v11, 0.0 }
 0x518   : > { %1534 = vadd.xlane.f32.xlu1 %v1533_v12 }
 0x51c   : > { %v3095_v13 = vpop.eup %2752 }
 0x51d   : > { %v1539_v14 = vsel %vm1472_vm7, %v3095_v13, 0.0  ;;  %v2755_v26 = vpop.eup %2754 }
 0x51e   : > { %1540 = vadd.xlane.f32.xlu1 %v1539_v14  ;;  %v1521_v27 = vsel %vm1472_vm7, %v2755_v26, 0.0  ;;  %v2757_v28 = vpop.eup %2756 }
 0x51f   : > { %v1524_v29 = vsel %vm1468_vm6, %v2757_v28, 0.0  ;;  %v3104_v30 = vpop.eup %2758 }
 0x520   : > { %v1530_v31 = vsel %vm1468_vm6, %v3104_v30, 0.0  ;;  %v3108_v32 = vpop.eup %2760 }
 0x521   : > { %v1536_v33 = vsel %vm1468_vm6, %v3108_v32, 0.0 }
 0x544   : > { %1522 = vadd.xlane.f32.xlu0 %v1521_v27 }
 0x548   : > { %1525 = vadd.xlane.f32.xlu0 %v1524_v29 }
 0x54c   : > { %1531 = vadd.xlane.f32.xlu0 %v1530_v31 }
 0x550   : > { %1537 = vadd.xlane.f32.xlu0 %v1536_v33 }
 0x587   : > { %v1131_v34 = vpop.trf.xlu0 }
 0x58b   : > { %v1132_v35 = vpop.trf.xlu0 }
 0x58c   : > { %v2686_v36 = vpack.i.bf16 %v1132_v35, %v1131_v34 }
 0x58e   : > { %2687 = vxpose.xlu1.b32.start.end [1/1] (short) (narrow) %v2686_v36, 16 }
 0x58f   : > { %v1133_v37 = vpop.trf.xlu0 }
 0x591   : > { %v1520_v42 = vpop.xlane.xlu1 %1519 }
 0x593   : > { %v1134_v38 = vpop.trf.xlu0 }
 0x594   : > { %v2698_v39 = vpack.i.bf16 %v1134_v38, %v1133_v37 }
 0x596   : > { %2699 = vxpose.xlu0.b32.start.end [1/1] (short) (narrow) %v2698_v39, 16 }
 0x59d   : > { %v1529_v44 = vpop.xlane.xlu1 %1528 }
 0x5a1   : > { %v1535_v46 = vpop.xlane.xlu1 %1534 }
 0x5a7   : > { %v1541_v47 = vpop.xlane.xlu1 %1540 }
 0x5cd   : > { %v1523_v40 = vpop.xlane.xlu0 %1522 }
 0x5ce   : > { %2762 = vrcp.f32 %v1523_v40 }
 0x5d1   : > { %v1526_v43 = vpop.xlane.xlu0 %1525 }
 0x5d2   : > { %2764 = vrcp.f32 %v1526_v43 }
 0x5d3   : > { %2766 = vrcp.f32 %v1520_v42 }
 0x5d4   : > { %2768 = vrcp.f32 %v1529_v44 }
 0x5d5   : > { %v1532_v45 = vpop.xlane.xlu0 %1531 }
 0x5d6   : > { %2770 = vrcp.f32 %v1532_v45 }
 0x5d9   : > { %v1538_v48 = vpop.xlane.xlu0 %1537 }
 0x5da   : > { %2772 = vrcp.f32 %v1538_v48  ;;  %v2730_v48 = vld [vmem:[%s2960_s0 + $0x8] sm:$0xff]  }
 0x5db   : > { %2774 = vrcp.f32 %v1535_v46  ;;  %v2763_v50 = vpop.eup %2762 }
 0x5dc   : > { %2776 = vrcp.f32 %v1541_v47  ;;  %v1551_v62 = vmul.f32 %v2763_v50, %v2755_v26 }
 0x5df   : > { %v2765_v54 = vpop.eup %2764 }
 0x5e0   : > { %v2767_v57 = vpop.eup %2766  ;;  %v1552_v63 = vmul.f32 %v2765_v54, %v2757_v28 }
 0x5e1   : > { %v2769_v58 = vpop.eup %2768  ;;  %v1550_v41 = vmul.f32 %v2767_v57, %v3083_v0 }
 0x5e2   : > { %v1553_v5 = vmul.f32 %v2769_v58, %v3087_v9 }
 0x5e3   : > { %v2771_v6 = vpop.eup %2770  ;;  %v1558_v12 = vpack.c.bf16 %v1551_v62, %v1550_v41 }
 0x5e4   : > { %v1559_v14 = vpack.c.bf16 %v1553_v5, %v1552_v63  ;;  %v1554_v21 = vmul.f32 %v2771_v6, %v3104_v30 }
 0x5e7   : > { %v2773_v15 = vpop.eup %2772 }
 0x5e8   : > { %v2775_v19 = vpop.eup %2774  ;;  %v1556_v22 = vmul.f32 %v2773_v15, %v3108_v32 }
 0x5e9   : > { %v2777_v0 = vpop.eup %2776  ;;  %v1555_v25 = vmul.f32 %v2775_v19, %v3091_v11 }
 0x5ea   : > { %v1557_v26 = vmul.f32 %v2777_v0, %v3095_v13  ;;  %v2732_v0 = vld [vmem:[%s2977_s26 + $0x8] sm:$0xff]  }
 0x5eb   : > { %v1560_v27 = vpack.c.bf16 %v1555_v25, %v1554_v21 }
 0x5ec   : > { %v1561_v28 = vpack.c.bf16 %v1557_v26, %v1556_v22 }
 0x60a   : > { %v2688_v49 = vpop.trf.xlu1 }
 0x60b   : > { %v2692_v51 = vunpack.i.h.bf16 %v2688_v49  ;;  %v2689_v52 = vunpack.i.l.bf16 %v2688_v49  ;;  %v2731_v49 = vld [vmem:[%s2960_s0] sm:$0xff]  }
 0x60e   : > { %v2693_v53 = vpop.trf.xlu1 }
 0x60f   : > { %v2697_v55 = vunpack.i.h.bf16 %v2693_v53  ;;  %v2694_v56 = vunpack.i.l.bf16 %v2693_v53 }
 0x611   : > { %v1275_v59 = vpack.c.bf16 %v2694_v56, %v2689_v52  ;;  %v1276_v60 = vpack.c.bf16 %v2697_v55, %v2692_v51 }
 0x612   : > { %v2700_v61 = vpop.trf.xlu0 }
 0x613   : > { %v1567_v1 = vsel %vm1565_vm8, %v1275_v59, 0  ;;  %v1614_v4 = vsel %vm1565_vm8, %v1276_v60, 0  ;;  %v2704_v7 = vunpack.i.h.bf16 %v2700_v61  ;;  %v2701_v8 = vunpack.i.l.bf16 %v2700_v61  ;;  %v2452_v59 = vld [vmem:[%s3266_s28] ss:$0 sm:$0xff] }
 0x614   : > { %2547 = vmatpush3.bf16.msra.mxu1 %v1567_v1  ;;  %2553 = vmatpush3.bf16.msra.mxu0 %v1614_v4 }
 0x615   : > { %2558 = vmatprep.subr.bf16.mxu1 %v2826_v17  ;;  %2564 = vmatprep.subr.bf16.mxu0 %v2826_v17 }
 0x616   : > { %v2705_v10 = vpop.trf.xlu0 }
 0x617   : > { %v2709_v16 = vunpack.i.h.bf16 %v2705_v10  ;;  %v2706_v18 = vunpack.i.l.bf16 %v2705_v10  ;;  %2549 = vmatmul.mubr.msk.bf16.vlgmr.msra.gmra.mxu1 %vm1468_vm6, %v1558_v12  ;;  %2555 = vmatmul.mubr.msk.bf16.vlgmr.msra.gmra.mxu0 %vm1468_vm6, %v1559_v14 }
 0x618   : > { %2560 = vmatprep.mubr.msk.bf16.mxu1 %vm2827_vm4, %v2826_v17  ;;  %2566 = vmatprep.mubr.msk.bf16.mxu0 %vm2827_vm4, %v2826_v17 }
 0x619   : > { %v1277_v9 = vpack.c.bf16 %v2706_v18, %v2701_v8  ;;  %v1278_v20 = vpack.c.bf16 %v2709_v16, %v2704_v7 }
 0x61b   : > { %v1661_v23 = vsel %vm1565_vm8, %v1277_v9, 0  ;;  %v1708_v24 = vsel %vm1565_vm8, %v1278_v20, 0  ;;  %v2733_v9 = vld [vmem:[%s2977_s26] sm:$0xff]   ;;  %s3267_s26 = scalar_lea.vmem %s3234_s7, %s2934_s15 }
 0x61c   : > { %2559 = vmatpush3.bf16.msra.mxu1 %v1661_v23  ;;  %2565 = vmatpush3.bf16.msra.mxu0 %v1708_v24 }
 0x61d   : > { %2570 = vmatprep.subr.bf16.mxu1 %v2826_v17  ;;  %2578 = vmatprep.subr.bf16.mxu0 %v2826_v17 }
 0x61f   : > { %2561 = vmatmul.mubr.msk.bf16.vlgmr.msra.gmra.mxu1 %vm1468_vm6, %v1560_v27  ;;  %2567 = vmatmul.mubr.msk.bf16.vlgmr.msra.gmra.mxu0 %vm1468_vm6, %v1561_v28  ;;  %v2456_v28 = vld [vmem:[%s3267_s26] ss:$0 sm:$0xff] }
 0x620   : > { %2574 = vmatprep.mubr.msk.bf16.mxu1 %vm2827_vm4, %v2826_v17  ;;  %2582 = vmatprep.mubr.msk.bf16.mxu0 %vm2827_vm4, %v2826_v17 }
 0x621   : > { %2571 = vmatpush3.bf16.msra.mxu1 %v2730_v48  ;;  %2579 = vmatpush3.bf16.msra.mxu0 %v2732_v0 }
 0x622   : > { %2572 = vmatprep.subr.bf16.mxu1 %v2826_v17  ;;  %2580 = vmatprep.subr.bf16.mxu0 %v2826_v17 }
 0x625   : > { %2573 = vmatpush3.bf16.msra.mxu1 %v2731_v49  ;;  %2581 = vmatpush3.bf16.msra.mxu0 %v2733_v9 }
 0x626   : > { %2586 = vmatprep.subr.bf16.mxu1 %v2826_v17 }
 0x6d7   : > { %v1603_v29 = vpop.f32.mrf.mxu1  ;;  %v1650_v11 = vpop.f32.mrf.mxu0 }
 0x6d8   : > { %v2710_v30 = vpack.i.bf16 %v1650_v11, %v1603_v29 }
 0x6d9   : > { %v2550_v13 = vpop.f32.mrf.mxu1  ;;  %v2556_v31 = vpop.f32.mrf.mxu0 }
 0x6da   : > { %2711 = vxpose.xlu1.b32.start [1/2] (short) (narrow) %v2710_v30, 8  ;;  %v2457_v13 = vld [vmem:[%s3268_s16] ss:$0 sm:$0xff] }
 0x6db   : > { %v1606_v32 = vpop.f32.mrf.mxu1  ;;  %v1653_v33 = vpop.f32.mrf.mxu0 }
 0x6dc   : > { %v2712_v34 = vpack.i.bf16 %v1653_v33, %v1606_v32 }
 0x6dd   : > { %v2551_v35 = vpop.f32.mrf.mxu1  ;;  %v2557_v36 = vpop.f32.mrf.mxu0 }
 0x6de   : > { %2713 = vxpose.xlu1.b32.end [2/2] (short) (narrow) %v2712_v34, 8  ;;  %v2734_v35 = vld [vmem:[%s2991_s22 + $0x38] sm:$0xff]   ;;  %v2735_v36 = vld [vmem:[%s2991_s22 + $0x30] sm:$0xff]  }
 0x6df   : > { %v1697_v37 = vpop.f32.mrf.mxu1  ;;  %v1744_v38 = vpop.f32.mrf.mxu0 }
 0x6e0   : > { %v2719_v39 = vpack.i.bf16 %v1744_v38, %v1697_v37  ;;  %v2736_v37 = vld [vmem:[%s2991_s22 + $0x28] sm:$0xff]   ;;  %v2737_v38 = vld [vmem:[%s2991_s22 + $0x20] sm:$0xff]  }
 0x6e1   : > { %v2562_v40 = vpop.f32.mrf.mxu1  ;;  %v2568_v42 = vpop.f32.mrf.mxu0 }
 0x6e2   : > { %2720 = vxpose.xlu0.b32.start [1/2] (short) (narrow) %v2719_v39, 8  ;;  %v2738_v39 = vld [vmem:[%s2991_s22 + $0x18] sm:$0xff]   ;;  %v2739_v40 = vld [vmem:[%s2991_s22 + $0x10] sm:$0xff]   ;;  %v2740_v42 = vld [vmem:[%s2991_s22 + $0x8] sm:$0xff]  }
 0x6e3   : > { %v1700_v43 = vpop.f32.mrf.mxu1  ;;  %v1747_v44 = vpop.f32.mrf.mxu0 }
 0x6e4   : > { %v2721_v45 = vpack.i.bf16 %v1747_v44, %v1700_v43  ;;  %v2741_v43 = vld [vmem:[%s2991_s22] sm:$0xff]  }
 0x6e5   : > { %v2563_v46 = vpop.f32.mrf.mxu1  ;;  %v2569_v47 = vpop.f32.mrf.mxu0  ;;  %v2458_v44 = vld [vmem:[%s631_s13] ss:$0 sm:$0xff] }
 0x6e6   : > { %2722 = vxpose.xlu0.b32.end [2/2] (short) (narrow) %v2721_v45, 8 }
 0x756   : > { %v2714_v50 = vpop.trf.xlu1 }
 0x757   : > { %v2715_v51 = vunpack.i.l.bf16 %v2714_v50  ;;  %v2718_v52 = vunpack.i.h.bf16 %v2714_v50 }
 0x759   : > { %1879 = vxpose.xlu1.b32.start [1/4] (short) (narrow) %v2715_v51, 16 }
 0x75d   : > { %1880 = vxpose.xlu1.b32.cont [2/4] (short) (narrow) %v2718_v52, 16 }
 0x75e   : > { %v2723_v53 = vpop.trf.xlu0 }
 0x75f   : > { %v2724_v54 = vunpack.i.l.bf16 %v2723_v53  ;;  %v2727_v55 = vunpack.i.h.bf16 %v2723_v53 }
 0x761   : > { %1881 = vxpose.xlu1.b32.cont [3/4] (short) (narrow) %v2724_v54, 16 }
 0x765   : > { %1882 = vxpose.xlu1.b32.end [4/4] (short) (narrow) %v2727_v55, 16 }
 0x7d5   : > { %v1895_v56 = vpop.trf.xlu1 }
 0x7d9   : > { %v1896_v57 = vpop.trf.xlu1 }
 0x7da   : > { %v1911_v58 = vpack.c.bf16 %v1896_v57, %v1895_v56 }
 0x7dc   : > { %2575 = vmatmul.mubr.msk.bf16.vlgmr.msra.gmra.mxu1 %vm660_vm2, %v1911_v58 }
 0x7dd   : > { %2602 = vmatprep.mubr.msk.bf16.mxu1 %vm2827_vm4, %v2826_v17  ;;  %2587 = vmatpush3.bf16.msra.mxu1 %v2734_v35 }
 0x7de   : > { %2588 = vmatprep.subr.bf16.mxu1 %v2826_v17 }
 0x7e1   : > { %2589 = vmatpush3.bf16.msra.mxu1 %v2735_v36 }
 0x7e2   : > { %2590 = vmatprep.subr.bf16.mxu1 %v2826_v17 }
 0x7e5   : > { %2591 = vmatpush3.bf16.msra.mxu1 %v2736_v37 }
 0x7e6   : > { %2592 = vmatprep.subr.bf16.mxu1 %v2826_v17 }
 0x7e9   : > { %2593 = vmatpush3.bf16.msra.mxu1 %v2737_v38 }
 0x7ea   : > { %2594 = vmatprep.subr.bf16.mxu1 %v2826_v17 }
 0x7ed   : > { %2595 = vmatpush3.bf16.msra.mxu1 %v2738_v39 }
 0x7ee   : > { %2596 = vmatprep.subr.bf16.mxu1 %v2826_v17 }
 0x7f1   : > { %2597 = vmatpush3.bf16.msra.mxu1 %v2739_v40 }
 0x7f2   : > { %2598 = vmatprep.subr.bf16.mxu1 %v2826_v17 }
 0x7f5   : > { %2599 = vmatpush3.bf16.msra.mxu1 %v2740_v42 }
 0x7f6   : > { %2600 = vmatprep.subr.bf16.mxu1 %v2826_v17 }
 0x7f9   : > { %2601 = vmatpush3.bf16.msra.mxu1 %v2741_v43 }
 0x89c   : > { %v1972_v60 = vpop.f32.mrf.mxu1 }
 0x89d   : > { %v1973_v61 = vadd.f32 %v2452_v59, %v1972_v60 }
 0x89e   : > { %v2576_v62 = vpop.f32.mrf.mxu1 }
 0x89f   : > { %v3151_v63 = vadd.f32 %v1973_v61, %v2999_v2 }
 0x8a0   : > { %v1975_v1 = vpop.f32.mrf.mxu1 }
 0x8a1   : > { %v1976_v4 = vadd.f32 %v2452_v59, %v1975_v1  ;;  %v1983_v41 = vsel %vm660_vm2, %v3151_v63, 0.0 }
 0x8a2   : > { %1984 = vadd.xlane.f32.xlu0 %v1983_v41  ;;  %v2577_v5 = vpop.f32.mrf.mxu1 }
 0x8a3   : > { %v3156_v6 = vadd.f32 %v1976_v4, %v3001_v3 }
 0x8a5   : > { %v1986_v7 = vsel %vm664_vm3, %v3156_v6, 0.0 }
 0x8a6   : > { %1987 = vadd.xlane.f32.xlu1 %v1986_v7 }
 0x92b   : > { %v1985_v8 = vpop.xlane.xlu0 %1984 }
 0x92c   : > { %v1989_v10 = vmul.f32 0.03125, %v1985_v8 }
 0x92e   : > { %v1991_v2 = vsub.f32 %v3151_v63, %v1989_v10  ;;  %v2462_v10 = vld [vmem:[%s639_s23] ss:$0 sm:$0xff] }
 0x92f   : > { %v1988_v12 = vpop.xlane.xlu1 %1987 }
 0x930   : > { %v1990_v14 = vmul.f32 0.03125, %v1988_v12  ;;  %v1993_v15 = vmul.f32 %v1991_v2, %v1991_v2 }
 0x932   : > { %v1992_v16 = vsub.f32 %v3156_v6, %v1990_v14  ;;  %v1995_v18 = vsel %vm660_vm2, %v1993_v15, 0.0 }
 0x933   : > { %1996 = vadd.xlane.f32.xlu0 %v1995_v18 }
 0x934   : > { %v1994_v19 = vmul.f32 %v1992_v16, %v1992_v16 }
 0x936   : > { %v1998_v3 = vsel %vm664_vm3, %v1994_v19, 0.0 }
 0x937   : > { %1999 = vadd.xlane.f32.xlu0 %v1998_v3 }
 0x9bc   : > { %v1997_v20 = vpop.xlane.xlu0 %1996 }
 0x9bd   : > { %v2001_v21 = vmul.f32 0.03125, %v1997_v20 }
 0x9bf   : > { %v2003_v22 = vadd.f32 1e-05, %v2001_v21 }
 0x9c0   : > { %v2000_v23 = vpop.xlane.xlu0 %1999 }
 0x9c1   : > { %2778 = vrsqrt.f32 %v2003_v22  ;;  %v2002_v24 = vmul.f32 0.03125, %v2000_v23 }
 0x9c3   : > { %v2004_v25 = vadd.f32 1e-05, %v2002_v24 }
 0x9c5   : > { %2780 = vrsqrt.f32 %v2004_v25 }
 0x9ce   : > { %v2779_v26 = vpop.eup %2778 }
 0x9cf   : > { %v2007_v27 = vmul.f32 %v2779_v26, %v1991_v2 }
 0x9d1   : > { %v2015_v30 = vmul.f32 %v2456_v28, %v2007_v27 }
 0x9d2   : > { %v2781_v29 = vpop.eup %2780 }
 0x9d3   : > { %v2008_v11 = vmul.f32 %v2781_v29, %v1992_v16  ;;  %v2023_v32 = vadd.f32 %v2457_v13, %v2015_v30 }
 0x9d5   : > { %v2016_v31 = vmul.f32 %v2456_v28, %v2008_v11 }
 0x9d7   : > { %v2024_v33 = vadd.f32 %v2457_v13, %v2016_v31 }
 0x9d9   : > { %v2025_v34 = vpack.c.bf16 %v2024_v33, %v2023_v32 }
 0x9db   : > { %2583 = vmatmul.mubr.msk.bf16.vlgmr.msra.gmra.mxu0 %vm660_vm2, %v2025_v34 }
 0xa9b   : > { %v2086_v45 = vpop.f32.mrf.mxu0 }
 0xa9c   : > { %v2087_v46 = vadd.f32 %v2458_v44, %v2086_v45 }
 0xa9d   : > { %v2584_v47 = vpop.f32.mrf.mxu0 }
 0xa9e   : > { %v2093_v48 = vmul.f32 %v2087_v46, %v2087_v46 }
 0xa9f   : > { %v2089_v49 = vpop.f32.mrf.mxu0 }
 0xaa0   : > { %v2095_v50 = vmul.f32 %v2093_v48, %v2087_v46  ;;  %v2090_v51 = vadd.f32 %v2458_v44, %v2089_v49 }
 0xaa1   : > { %v2585_v52 = vpop.f32.mrf.mxu0 }
 0xaa2   : > { %v2097_v53 = vmul.f32 0.044715, %v2095_v50  ;;  %v2094_v54 = vmul.f32 %v2090_v51, %v2090_v51 }
 0xaa4   : > { %v2099_v55 = vadd.f32 %v2097_v53, %v2087_v46  ;;  %v2096_v56 = vmul.f32 %v2094_v54, %v2090_v51 }
 0xaa6   : > { %v2101_v17 = vmul.f32 0.7978846, %v2099_v55  ;;  %v2098_v57 = vmul.f32 0.044715, %v2096_v56 }
 0xaa8   : > { %2782 = vtanh.f32 %v2101_v17  ;;  %v2100_v58 = vadd.f32 %v2098_v57, %v2090_v51 }
 0xaaa   : > { %v2102_v59 = vmul.f32 0.7978846, %v2100_v58 }
 0xaac   : > { %2784 = vtanh.f32 %v2102_v59 }
 0xab5   : > { %v2783_v60 = vpop.eup %2782 }
 0xab6   : > { %v2105_v61 = vadd.f32 1.0, %v2783_v60 }
 0xab8   : > { %v2107_v1 = vmul.f32 0.5, %v2105_v61 }
 0xab9   : > { %v2785_v62 = vpop.eup %2784 }
 0xaba   : > { %v2106_v4 = vadd.f32 1.0, %v2785_v62  ;;  %v2109_v5 = vmul.f32 %v2107_v1, %v2087_v46 }
 0xabc   : > { %v2108_v41 = vmul.f32 0.5, %v2106_v4 }
 0xabe   : > { %v2110_v7 = vmul.f32 %v2108_v41, %v2090_v51 }
 0xac0   : > { %v2111_v8 = vpack.c.bf16 %v2110_v7, %v2109_v5 }
 0xac2   : > { %2603 = vmatmul.mubr.bf16.vlgmr.msra.gmra.mxu1 %v2111_v8 }
 0xb82   : > { %v2217_v2 = vpop.f32.mrf.mxu1 }
 0xb83   : > { %v2218_v12 = vadd.f32 %v2462_v10, %v2217_v2 }
 0xb84   : > { %v2604_v14 = vpop.f32.mrf.mxu1 }
 0xb85   : > { %v2224_v15 = vadd.f32 %v2218_v12, %v3151_v63 }
 0xb86   : > { %v2220_v16 = vpop.f32.mrf.mxu1 }
 0xb87   : > { %2226 = vst.msk [vmem:[#allocation2] sm:$0xff] %vm660_vm2, %v2224_v15  ;;  %v2221_v18 = vadd.f32 %v2462_v10, %v2220_v16  ;;  %2231 = sbr.rel (%p2471_p8) target bundleno = 2958 (0xb8e), region = 80 }
 0xb88   : > { %v2605_v19 = vpop.f32.mrf.mxu1 }
 0xb89   : > { %v2225_v3 = vadd.f32 %v2221_v18, %v3156_v6 }
 0xb8b   : > { %2227 = vst.msk [vmem:[#allocation2 + $0x8] sm:$0x3f] %vm664_vm3, %v2225_v3 }
 0xb8c   : > { %2232 = vst.msk [vmem:[%s2996_s2] sm:$0xff] %vm660_vm2, %v2224_v15 }
 0xb8d   : > { %2233 = vst.msk [vmem:[%s2996_s2 + $0x8] sm:$0x3f] %vm664_vm3, %v2225_v3 }
 0xb8e PF: > { %s3270_s15 = sld [smem:[#allocation6_spill]] }
 0xb8f   : > { %s3271_s25 = sld [smem:[#allocation4_spill]] }
 0xb90   : > { %s3272_s26 = sld [smem:[#allocation5_spill]] }
 0xb91   : > { %s3273_s27 = sld [smem:[#allocation7_spill]] }
 0xb92   : > { %s3274_s28 = sld [smem:[#allocation8_spill]] }
 0xb94   : > { %s23_s29 = sadd.s32 1, %s3270_s15  }
 0xb95   : > { %p20_p9 = scmp.ge.s32.totalorder %s23_s29, 6  }
 0xb97   :  { %22 = sbr.rel (!%p20_p9) target bundleno = 6 (0x6), region = 146 }

</bundles_post_ra>
